<compile_context>
chip_gen: v5e
topology: v5e:2x2
jax: 0.10.0
libtpu: 0.0.40
codegen_flags: <defaults>
</compile_context>

<pallas_src>
import functools

import jax
import jax.numpy as jnp
from jax.experimental import pallas as pl
from jax.experimental.pallas import tpu as pltpu

LANE = 128
# 1024 rows * 128 lanes * 4 B = 512 KiB per input buffer; 2 inputs double-buffered ~= 2 MiB,
# comfortably inside the scoped-VMEM budget on v5e / v6e / v7x.
MAX_TILE_ROWS = 1024


def _round_up(x, m):
    return (x + m - 1) // m * m


def _to_lane_dense(x, tile_rows):
    """Flatten to (rows, 128) with rows a multiple of tile_rows; zero-pad the tail."""
    n = x.size
    rows = pl.cdiv(n, LANE)
    rows_p = _round_up(rows, tile_rows)
    pad = rows_p * LANE - n
    xf = x.reshape(-1)
    if pad:
        xf = jnp.pad(xf, (0, pad))
    return xf.reshape(rows_p, LANE)


def _sum_kernel(real_ref, fake_ref, out_ref, acc_r, acc_f):
    """Accumulates global sums of real and g_fake (padded zeros contribute 0)."""
    i = pl.program_id(0)

    @pl.when(i == 0)
    def _():
        acc_r[...] = jnp.zeros_like(acc_r)
        acc_f[...] = jnp.zeros_like(acc_f)

    r = real_ref[...].astype(jnp.float32)
    f = fake_ref[...].astype(jnp.float32)
    acc_r[...] += jnp.sum(r, axis=0, keepdims=True)
    acc_f[...] += jnp.sum(f, axis=0, keepdims=True)

    @pl.when(i == pl.num_programs(0) - 1)
    def _():
        out_ref[0] = jnp.sum(acc_r[...])
        out_ref[1] = jnp.sum(acc_f[...])


def _bce_sum_kernel(means_ref, real_ref, fake_ref, out_ref, acc1, acc2, *,
                    n_valid, tile_rows):
    """Accumulates sum(softplus(real - m_fake)) and sum(softplus(-(g_fake - m_real)))."""
    i = pl.program_id(0)

    @pl.when(i == 0)
    def _():
        acc1[...] = jnp.zeros_like(acc1)
        acc2[...] = jnp.zeros_like(acc2)

    m_real = means_ref[0]
    m_fake = means_ref[1]

    r = real_ref[...].astype(jnp.float32)
    f = fake_ref[...].astype(jnp.float32)

    # Mask out the zero-padded tail (cheap VPU iota work, no extra HBM traffic).
    row_ids = jax.lax.broadcasted_iota(jnp.int32, (tile_rows, LANE), 0)
    col_ids = jax.lax.broadcasted_iota(jnp.int32, (tile_rows, LANE), 1)
    flat = (i * tile_rows + row_ids) * LANE + col_ids
    valid = (flat < n_valid).astype(jnp.float32)

    # BCEWithLogits, stable forms: label 0 -> softplus(x); label 1 -> softplus(-x).
    x1 = r - m_fake                       # logits compared against zeros
    x2 = f - m_real                       # logits compared against ones
    sp1 = jnp.maximum(x1, 0.0) + jnp.log1p(jnp.exp(-jnp.abs(x1)))
    sp2 = jnp.maximum(-x2, 0.0) + jnp.log1p(jnp.exp(-jnp.abs(x2)))

    acc1[...] += jnp.sum(sp1 * valid, axis=0, keepdims=True)
    acc2[...] += jnp.sum(sp2 * valid, axis=0, keepdims=True)

    @pl.when(i == pl.num_programs(0) - 1)
    def _():
        out_ref[0] = jnp.sum(acc1[...])
        out_ref[1] = jnp.sum(acc2[...])


def radiscrim_loss(real, g_fake):
    """Pallas TPU implementation of RaDiscrim_Loss.forward(real, g_fake). Returns scalar f32."""
    assert real.shape == g_fake.shape, "real and g_fake (and the label map) must share a shape"
    n = real.size
    itemsize = jnp.dtype(real.dtype).itemsize
    rows = pl.cdiv(n, LANE)
    tile_rows = min(MAX_TILE_ROWS, _round_up(rows, 8))

    real2 = _to_lane_dense(real, tile_rows)
    fake2 = _to_lane_dense(g_fake, tile_rows)
    rows_p = real2.shape[0]
    grid = (rows_p // tile_rows,)

    tile_spec = pl.BlockSpec((tile_rows, LANE), lambda i: (i, 0))
    smem_spec = pl.BlockSpec(memory_space=pltpu.MemorySpace.SMEM)
    cparams = pltpu.CompilerParams(dimension_semantics=("arbitrary",))

    # Pass 1: global sums -> means.
    sums = pl.pallas_call(
        _sum_kernel,
        out_shape=jax.ShapeDtypeStruct((2,), jnp.float32),
        grid_spec=pltpu.PrefetchScalarGridSpec(
            num_scalar_prefetch=0,
            grid=grid,
            in_specs=[tile_spec, tile_spec],
            out_specs=smem_spec,
            scratch_shapes=[pltpu.VMEM((1, LANE), jnp.float32),
                            pltpu.VMEM((1, LANE), jnp.float32)]),
        compiler_params=cparams,
        cost_estimate=pl.CostEstimate(
            flops=2 * n, transcendentals=0, bytes_accessed=2 * n * itemsize),
    )(real2, fake2)

    means = jnp.stack([sums[0] / n, sums[1] / n]).astype(jnp.float32)  # [m_real, m_fake]

    # Pass 2: summed per-element BCE-with-logits losses.
    bce_sums = pl.pallas_call(
        functools.partial(_bce_sum_kernel, n_valid=n, tile_rows=tile_rows),
        out_shape=jax.ShapeDtypeStruct((2,), jnp.float32),
        grid_spec=pltpu.PrefetchScalarGridSpec(
            num_scalar_prefetch=0,
            grid=grid,
            in_specs=[smem_spec, tile_spec, tile_spec],
            out_specs=smem_spec,
            scratch_shapes=[pltpu.VMEM((1, LANE), jnp.float32),
                            pltpu.VMEM((1, LANE), jnp.float32)]),
        compiler_params=cparams,
        cost_estimate=pl.CostEstimate(
            flops=12 * n, transcendentals=4 * n, bytes_accessed=2 * n * itemsize),
    )(means, real2, fake2)

    loss1 = bce_sums[0] / n     # BCEWithLogits(real - mean(g_fake), zeros), reduction='mean'
    loss2 = bce_sums[1] / n     # BCEWithLogits(g_fake - mean(real), ones),  reduction='mean'
    return (loss1 + loss2) * 0.5


def radiscrim_loss_ref(real, g_fake):
    """Pure-JAX reference (matches torch BCEWithLogitsLoss semantics)."""
    real = real.astype(jnp.float32)
    g_fake = g_fake.astype(jnp.float32)
    softplus = lambda x: jnp.maximum(x, 0.0) + jnp.log1p(jnp.exp(-jnp.abs(x)))
    loss1 = jnp.mean(softplus(real - jnp.mean(g_fake)))      # target = 0
    loss2 = jnp.mean(softplus(-(g_fake - jnp.mean(real))))   # target = 1
    return 0.5 * (loss1 + loss2)


if __name__ == "__main__":
    key = jax.random.PRNGKey(0)
    k1, k2 = jax.random.split(key)
    # Discriminator output maps: shape (1, 3, H, W) to match the hard-coded label shape.
    real = jax.random.normal(k1, (1, 3, 16, 16), dtype=jnp.float32)
    g_fake = jax.random.normal(k2, (1, 3, 16, 16), dtype=jnp.float32)

    loss_fn = jax.jit(radiscrim_loss)
    out = jax.block_until_ready(loss_fn(real, g_fake))
    ref = jax.block_until_ready(radiscrim_loss_ref(real, g_fake))
    assert jnp.allclose(out, ref, rtol=1e-5, atol=1e-6), (out, ref)

    print("KERNEL_OK")
</pallas_src>

<mosaic_0001>
module attributes {stable_mosaic.version = 11 : i64} {
  func.func @_sum_kernel(%arg0: i32, %arg1: memref<8x128xf32, #tpu.memory_space<vmem>>, %arg2: memref<8x128xf32, #tpu.memory_space<vmem>>, %arg3: memref<2xf32, #tpu.memory_space<smem>>, %arg4: memref<1x128xf32, #tpu.memory_space<vmem>>, %arg5: memref<1x128xf32, #tpu.memory_space<vmem>>) attributes {dimension_semantics = [#tpu.dimension_semantics<arbitrary>], iteration_bounds = array<i64: 1>, scalar_prefetch = 0 : i64, scratch_operands = 2 : i64, tpu.core_type = #tpu.core_type<tc>, window_params = [{transform_indices = @transform_0, window_bounds = array<i64: 8, 128>}, {transform_indices = @transform_1, window_bounds = array<i64: 8, 128>}, {transform_indices = @transform_2, window_bounds = array<i64: 2>}]} {
    %c0_i32 = arith.constant 0 : i32
    %0 = arith.cmpi eq, %arg0, %c0_i32 : i32
    %1 = arith.extui %0 : i1 to i32
    %c0_i32_0 = arith.constant 0 : i32
    %2 = arith.cmpi ne, %1, %c0_i32_0 : i32
    scf.if %2 {
      %cst_15 = arith.constant 0.000000e+00 : f32
      %18 = vector.broadcast %cst_15 : f32 to vector<1x128xf32>
      %c0_16 = arith.constant 0 : index
      %c0_17 = arith.constant 0 : index
      %19 = vector.load %arg4[%c0_16, %c0_17] : memref<1x128xf32, #tpu.memory_space<vmem>>, vector<1x128xf32>
      tpu.vector_store %arg4[%c0_16, %c0_17], %18 {strides = array<i32>} : memref<1x128xf32, #tpu.memory_space<vmem>>, vector<1x128xf32>,
      %cst_18 = arith.constant 0.000000e+00 : f32
      %20 = vector.broadcast %cst_18 : f32 to vector<1x128xf32>
      %c0_19 = arith.constant 0 : index
      %c0_20 = arith.constant 0 : index
      %21 = vector.load %arg5[%c0_19, %c0_20] : memref<1x128xf32, #tpu.memory_space<vmem>>, vector<1x128xf32>
      tpu.vector_store %arg5[%c0_19, %c0_20], %20 {strides = array<i32>} : memref<1x128xf32, #tpu.memory_space<vmem>>, vector<1x128xf32>,
    } else {
    }
    %c0 = arith.constant 0 : index
    %c0_1 = arith.constant 0 : index
    %3 = vector.load %arg1[%c0, %c0_1] : memref<8x128xf32, #tpu.memory_space<vmem>>, vector<8x128xf32>
    %c0_2 = arith.constant 0 : index
    %c0_3 = arith.constant 0 : index
    %4 = vector.load %arg2[%c0_2, %c0_3] : memref<8x128xf32, #tpu.memory_space<vmem>>, vector<8x128xf32>
    %c0_4 = arith.constant 0 : index
    %c0_5 = arith.constant 0 : index
    %5 = vector.load %arg4[%c0_4, %c0_5] : memref<1x128xf32, #tpu.memory_space<vmem>>, vector<1x128xf32>
    %cst = arith.constant dense<0.000000e+00> : vector<128xf32>
    %6 = vector.multi_reduction <add>, %3, %cst [0] : vector<8x128xf32> to vector<128xf32>
    %7 = vector.shape_cast %6 : vector<128xf32> to vector<1x128xf32>
    %8 = arith.addf %5, %7 : vector<1x128xf32>
    %c0_6 = arith.constant 0 : index
    %c0_7 = arith.constant 0 : index
    %9 = vector.load %arg4[%c0_6, %c0_7] : memref<1x128xf32, #tpu.memory_space<vmem>>, vector<1x128xf32>
    tpu.vector_store %arg4[%c0_6, %c0_7], %8 {strides = array<i32>} : memref<1x128xf32, #tpu.memory_space<vmem>>, vector<1x128xf32>,
    %c0_8 = arith.constant 0 : index
    %c0_9 = arith.constant 0 : index
    %10 = vector.load %arg5[%c0_8, %c0_9] : memref<1x128xf32, #tpu.memory_space<vmem>>, vector<1x128xf32>
    %cst_10 = arith.constant dense<0.000000e+00> : vector<128xf32>
    %11 = vector.multi_reduction <add>, %4, %cst_10 [0] : vector<8x128xf32> to vector<128xf32>
    %12 = vector.shape_cast %11 : vector<128xf32> to vector<1x128xf32>
    %13 = arith.addf %10, %12 : vector<1x128xf32>
    %c0_11 = arith.constant 0 : index
    %c0_12 = arith.constant 0 : index
    %14 = vector.load %arg5[%c0_11, %c0_12] : memref<1x128xf32, #tpu.memory_space<vmem>>, vector<1x128xf32>
    tpu.vector_store %arg5[%c0_11, %c0_12], %13 {strides = array<i32>} : memref<1x128xf32, #tpu.memory_space<vmem>>, vector<1x128xf32>,
    %c0_i32_13 = arith.constant 0 : i32
    %15 = arith.cmpi eq, %arg0, %c0_i32_13 : i32
    %16 = arith.extui %15 : i1 to i32
    %c0_i32_14 = arith.constant 0 : i32
    %17 = arith.cmpi ne, %16, %c0_i32_14 : i32
    scf.if %17 {
      %c0_15 = arith.constant 0 : index
      %c0_16 = arith.constant 0 : index
      %18 = vector.load %arg4[%c0_15, %c0_16] : memref<1x128xf32, #tpu.memory_space<vmem>>, vector<1x128xf32>
      %19 = vector.shape_cast %18 : vector<1x128xf32> to vector<1x1x128xf32>
      %cst_17 = arith.constant dense<0.000000e+00> : vector<1xf32>
      %20 = vector.multi_reduction <add>, %19, %cst_17 [1, 2] : vector<1x1x128xf32> to vector<1xf32>
      %21 = vector.shape_cast %20 : vector<1xf32> to vector<1x1x1xf32>
      %22 = vector.extract %21[0, 0, 0] : f32 from vector<1x1x1xf32>
      %c0_18 = arith.constant 0 : index
      %23 = memref.load %arg3[%c0_18] : memref<2xf32, #tpu.memory_space<smem>>
      memref.store %22, %arg3[%c0_18] : memref<2xf32, #tpu.memory_space<smem>>
      %c0_19 = arith.constant 0 : index
      %c0_20 = arith.constant 0 : index
      %24 = vector.load %arg5[%c0_19, %c0_20] : memref<1x128xf32, #tpu.memory_space<vmem>>, vector<1x128xf32>
      %25 = vector.shape_cast %24 : vector<1x128xf32> to vector<1x1x128xf32>
      %cst_21 = arith.constant dense<0.000000e+00> : vector<1xf32>
      %26 = vector.multi_reduction <add>, %25, %cst_21 [1, 2] : vector<1x1x128xf32> to vector<1xf32>
      %27 = vector.shape_cast %26 : vector<1xf32> to vector<1x1x1xf32>
      %28 = vector.extract %27[0, 0, 0] : f32 from vector<1x1x1xf32>
      %c1 = arith.constant 1 : index
      %29 = memref.load %arg3[%c1] : memref<2xf32, #tpu.memory_space<smem>>
      memref.store %28, %arg3[%c1] : memref<2xf32, #tpu.memory_space<smem>>
    } else {
    }
    return
  }
  func.func @transform_0(%arg0: i32) -> (i32, i32) {
    %c0_i32 = arith.constant 0 : i32
    %c0_i32_0 = arith.constant 0 : i32
    return %arg0, %c0_i32 : i32, i32
  }
  func.func @transform_1(%arg0: i32) -> (i32, i32) {
    %c0_i32 = arith.constant 0 : i32
    %c0_i32_0 = arith.constant 0 : i32
    return %arg0, %c0_i32 : i32, i32
  }
  func.func @transform_2(%arg0: i32) -> i32 {
    %c0_i32 = arith.constant 0 : i32
    %c0_i32_0 = arith.constant 0 : i32
    return %c0_i32 : i32
  }
}

module attributes {stable_mosaic.version = 11 : i64} {
  func.func @_bce_sum_kernel(%arg0: i32, %arg1: memref<2xf32, #tpu.memory_space<smem>>, %arg2: memref<8x128xf32, #tpu.memory_space<vmem>>, %arg3: memref<8x128xf32, #tpu.memory_space<vmem>>, %arg4: memref<2xf32, #tpu.memory_space<smem>>, %arg5: memref<1x128xf32, #tpu.memory_space<vmem>>, %arg6: memref<1x128xf32, #tpu.memory_space<vmem>>) attributes {dimension_semantics = [#tpu.dimension_semantics<arbitrary>], iteration_bounds = array<i64: 1>, scalar_prefetch = 0 : i64, scratch_operands = 2 : i64, tpu.core_type = #tpu.core_type<tc>, window_params = [{transform_indices = @transform_0, window_bounds = array<i64: 2>}, {transform_indices = @transform_1, window_bounds = array<i64: 8, 128>}, {transform_indices = @transform_2, window_bounds = array<i64: 8, 128>}, {transform_indices = @transform_3, window_bounds = array<i64: 2>}]} {
    %c0_i32 = arith.constant 0 : i32
    %0 = arith.cmpi eq, %arg0, %c0_i32 : i32
    %1 = arith.extui %0 : i1 to i32
    %c0_i32_0 = arith.constant 0 : i32
    %2 = arith.cmpi ne, %1, %c0_i32_0 : i32
    scf.if %2 {
      %cst_21 = arith.constant 0.000000e+00 : f32
      %56 = vector.broadcast %cst_21 : f32 to vector<1x128xf32>
      %c0_22 = arith.constant 0 : index
      %c0_23 = arith.constant 0 : index
      %57 = vector.load %arg5[%c0_22, %c0_23] : memref<1x128xf32, #tpu.memory_space<vmem>>, vector<1x128xf32>
      tpu.vector_store %arg5[%c0_22, %c0_23], %56 {strides = array<i32>} : memref<1x128xf32, #tpu.memory_space<vmem>>, vector<1x128xf32>,
      %cst_24 = arith.constant 0.000000e+00 : f32
      %58 = vector.broadcast %cst_24 : f32 to vector<1x128xf32>
      %c0_25 = arith.constant 0 : index
      %c0_26 = arith.constant 0 : index
      %59 = vector.load %arg6[%c0_25, %c0_26] : memref<1x128xf32, #tpu.memory_space<vmem>>, vector<1x128xf32>
      tpu.vector_store %arg6[%c0_25, %c0_26], %58 {strides = array<i32>} : memref<1x128xf32, #tpu.memory_space<vmem>>, vector<1x128xf32>,
    } else {
    }
    %c0 = arith.constant 0 : index
    %3 = memref.load %arg1[%c0] : memref<2xf32, #tpu.memory_space<smem>>
    %c1 = arith.constant 1 : index
    %4 = memref.load %arg1[%c1] : memref<2xf32, #tpu.memory_space<smem>>
    %c0_1 = arith.constant 0 : index
    %c0_2 = arith.constant 0 : index
    %5 = vector.load %arg2[%c0_1, %c0_2] : memref<8x128xf32, #tpu.memory_space<vmem>>, vector<8x128xf32>
    %c0_3 = arith.constant 0 : index
    %c0_4 = arith.constant 0 : index
    %6 = vector.load %arg3[%c0_3, %c0_4] : memref<8x128xf32, #tpu.memory_space<vmem>>, vector<8x128xf32>
    %7 = tpu.iota {dimensions = array<i32: 0>} : vector<8x128xi32>
    %8 = tpu.iota {dimensions = array<i32: 1>} : vector<8x128xi32>
    %c8_i32 = arith.constant 8 : i32
    %9 = arith.muli %arg0, %c8_i32 : i32
    %10 = vector.broadcast %9 : i32 to vector<8x128xi32>
    %11 = arith.addi %10, %7 : vector<8x128xi32>
    %c128_i32 = arith.constant 128 : i32
    %12 = vector.broadcast %c128_i32 : i32 to vector<8x128xi32>
    %13 = arith.muli %11, %12 : vector<8x128xi32>
    %14 = arith.addi %13, %8 : vector<8x128xi32>
    %c768_i32 = arith.constant 768 : i32
    %15 = vector.broadcast %c768_i32 : i32 to vector<8x128xi32>
    %16 = arith.cmpi slt, %14, %15 : vector<8x128xi32>
    %17 = arith.extui %16 : vector<8x128xi1> to vector<8x128xi32>
    %18 = arith.sitofp %17 : vector<8x128xi32> to vector<8x128xf32>
    %19 = vector.broadcast %4 : f32 to vector<8x128xf32>
    %20 = arith.subf %5, %19 : vector<8x128xf32>
    %21 = vector.broadcast %3 : f32 to vector<8x128xf32>
    %22 = arith.subf %6, %21 : vector<8x128xf32>
    %cst = arith.constant 0.000000e+00 : f32
    %23 = vector.broadcast %cst : f32 to vector<8x128xf32>
    %24 = arith.maximumf %20, %23 : vector<8x128xf32>
    %25 = math.absf %20 : vector<8x128xf32>
    %cst_5 = arith.constant 0.000000e+00 : f32
    %26 = vector.broadcast %cst_5 : f32 to vector<8x128xf32>
    %27 = arith.subf %26, %25 : vector<8x128xf32>
    %28 = math.exp %27 : vector<8x128xf32>
    %29 = math.log1p %28 : vector<8x128xf32>
    %30 = arith.addf %24, %29 : vector<8x128xf32>
    %cst_6 = arith.constant 0.000000e+00 : f32
    %31 = vector.broadcast %cst_6 : f32 to vector<8x128xf32>
    %32 = arith.subf %31, %22 : vector<8x128xf32>
    %cst_7 = arith.constant 0.000000e+00 : f32
    %33 = vector.broadcast %cst_7 : f32 to vector<8x128xf32>
    %34 = arith.maximumf %32, %33 : vector<8x128xf32>
    %35 = math.absf %22 : vector<8x128xf32>
    %cst_8 = arith.constant 0.000000e+00 : f32
    %36 = vector.broadcast %cst_8 : f32 to vector<8x128xf32>
    %37 = arith.subf %36, %35 : vector<8x128xf32>
    %38 = math.exp %37 : vector<8x128xf32>
    %39 = math.log1p %38 : vector<8x128xf32>
    %40 = arith.addf %34, %39 : vector<8x128xf32>
    %c0_9 = arith.constant 0 : index
    %c0_10 = arith.constant 0 : index
    %41 = vector.load %arg5[%c0_9, %c0_10] : memref<1x128xf32, #tpu.memory_space<vmem>>, vector<1x128xf32>
    %42 = arith.mulf %30, %18 : vector<8x128xf32>
    %cst_11 = arith.constant dense<0.000000e+00> : vector<128xf32>
    %43 = vector.multi_reduction <add>, %42, %cst_11 [0] : vector<8x128xf32> to vector<128xf32>
    %44 = vector.shape_cast %43 : vector<128xf32> to vector<1x128xf32>
    %45 = arith.addf %41, %44 : vector<1x128xf32>
    %c0_12 = arith.constant 0 : index
    %c0_13 = arith.constant 0 : index
    %46 = vector.load %arg5[%c0_12, %c0_13] : memref<1x128xf32, #tpu.memory_space<vmem>>, vector<1x128xf32>
    tpu.vector_store %arg5[%c0_12, %c0_13], %45 {strides = array<i32>} : memref<1x128xf32, #tpu.memory_space<vmem>>, vector<1x128xf32>,
    %c0_14 = arith.constant 0 : index
    %c0_15 = arith.constant 0 : index
    %47 = vector.load %arg6[%c0_14, %c0_15] : memref<1x128xf32, #tpu.memory_space<vmem>>, vector<1x128xf32>
    %48 = arith.mulf %40, %18 : vector<8x128xf32>
    %cst_16 = arith.constant dense<0.000000e+00> : vector<128xf32>
    %49 = vector.multi_reduction <add>, %48, %cst_16 [0] : vector<8x128xf32> to vector<128xf32>
    %50 = vector.shape_cast %49 : vector<128xf32> to vector<1x128xf32>
    %51 = arith.addf %47, %50 : vector<1x128xf32>
    %c0_17 = arith.constant 0 : index
    %c0_18 = arith.constant 0 : index
    %52 = vector.load %arg6[%c0_17, %c0_18] : memref<1x128xf32, #tpu.memory_space<vmem>>, vector<1x128xf32>
    tpu.vector_store %arg6[%c0_17, %c0_18], %51 {strides = array<i32>} : memref<1x128xf32, #tpu.memory_space<vmem>>, vector<1x128xf32>,
    %c0_i32_19 = arith.constant 0 : i32
    %53 = arith.cmpi eq, %arg0, %c0_i32_19 : i32
    %54 = arith.extui %53 : i1 to i32
    %c0_i32_20 = arith.constant 0 : i32
    %55 = arith.cmpi ne, %54, %c0_i32_20 : i32
    scf.if %55 {
      %c0_21 = arith.constant 0 : index
      %c0_22 = arith.constant 0 : index
      %56 = vector.load %arg5[%c0_21, %c0_22] : memref<1x128xf32, #tpu.memory_space<vmem>>, vector<1x128xf32>
      %57 = vector.shape_cast %56 : vector<1x128xf32> to vector<1x1x128xf32>
      %cst_23 = arith.constant dense<0.000000e+00> : vector<1xf32>
      %58 = vector.multi_reduction <add>, %57, %cst_23 [1, 2] : vector<1x1x128xf32> to vector<1xf32>
      %59 = vector.shape_cast %58 : vector<1xf32> to vector<1x1x1xf32>
      %60 = vector.extract %59[0, 0, 0] : f32 from vector<1x1x1xf32>
      %c0_24 = arith.constant 0 : index
      %61 = memref.load %arg4[%c0_24] : memref<2xf32, #tpu.memory_space<smem>>
      memref.store %60, %arg4[%c0_24] : memref<2xf32, #tpu.memory_space<smem>>
      %c0_25 = arith.constant 0 : index
      %c0_26 = arith.constant 0 : index
      %62 = vector.load %arg6[%c0_25, %c0_26] : memref<1x128xf32, #tpu.memory_space<vmem>>, vector<1x128xf32>
      %63 = vector.shape_cast %62 : vector<1x128xf32> to vector<1x1x128xf32>
      %cst_27 = arith.constant dense<0.000000e+00> : vector<1xf32>
      %64 = vector.multi_reduction <add>, %63, %cst_27 [1, 2] : vector<1x1x128xf32> to vector<1xf32>
      %65 = vector.shape_cast %64 : vector<1xf32> to vector<1x1x1xf32>
      %66 = vector.extract %65[0, 0, 0] : f32 from vector<1x1x1xf32>
      %c1_28 = arith.constant 1 : index
      %67 = memref.load %arg4[%c1_28] : memref<2xf32, #tpu.memory_space<smem>>
      memref.store %66, %arg4[%c1_28] : memref<2xf32, #tpu.memory_space<smem>>
    } else {
    }
    return
  }
  func.func @transform_0(%arg0: i32) -> i32 {
    %c0_i32 = arith.constant 0 : i32
    %c0_i32_0 = arith.constant 0 : i32
    return %c0_i32 : i32
  }
  func.func @transform_1(%arg0: i32) -> (i32, i32) {
    %c0_i32 = arith.constant 0 : i32
    %c0_i32_0 = arith.constant 0 : i32
    return %arg0, %c0_i32 : i32, i32
  }
  func.func @transform_2(%arg0: i32) -> (i32, i32) {
    %c0_i32 = arith.constant 0 : i32
    %c0_i32_0 = arith.constant 0 : i32
    return %arg0, %c0_i32 : i32, i32
  }
  func.func @transform_3(%arg0: i32) -> i32 {
    %c0_i32 = arith.constant 0 : i32
    %c0_i32_0 = arith.constant 0 : i32
    return %c0_i32 : i32
  }
}

</mosaic_0001>

<bundles_post_ra>
// kernel: radiscrim_loss.2
= control target key start
LH: loop header
LB: loop body
LE: loop exit
PB: predicated region body
PF: predicated region fallthrough
CT: control target
= control target key end

     0   :  { %s129_s0 = inlined_call_operand.vmem [shape: f32[8,128], index: 0, kind: input, shape index: {}]   ;;  %s130_s1 = inlined_call_operand.vmem [shape: f32[8,128], index: 1, kind: input, shape index: {}]   ;;  %s131_s2 = inlined_call_operand.vmem [shape: f32[2], index: 2, kind: output, shape index: {}]  }
   0x1   :  { %v18_v0 = vld [vmem:[%s129_s0] sm:$0xff] }
   0x2   :  { %v19_v1 = vld [vmem:[%s130_s1] sm:$0xff] }
   0x3   :  { %7 = vsyncpa [#allocation5], 0  ;;  %v103_v2 = vmov 0.0   ;;  %v21_v3 = vrot.slane %v18_v0, 4  ;;  %v30_v4 = vrot.slane %v19_v1, 4  ;;  %vm42_vm0 = vcmask 1040384  }
   0x4   :  { %16 = vst [vmem:[#allocation2] sm:$0x1] %v103_v2  ;;  %s73_s14 = sshll.u32 %s131_s2, 4  ;;  %s104_s16 = smov [#allocation4]   ;;  %s74_s14 = int_to_ptr.vmem [resolvable:$true] %s73_s14 }
   0x5   :  { %17 = vst [vmem:[#allocation3] sm:$0x1] %v103_v2  ;;  %v22_v5 = vadd.f32 %v21_v3, %v18_v0  ;;  %v31_v6 = vadd.f32 %v30_v4, %v19_v1 }
   0x7   :  { %v23_v7 = vrot.slane %v22_v5, 2  ;;  %v32_v8 = vrot.slane %v31_v6, 2 }
   0x9   :  { %v24_v9 = vadd.f32 %v23_v7, %v22_v5  ;;  %v33_v10 = vadd.f32 %v32_v8, %v31_v6 }
   0xb   :  { %v25_v11 = vrot.slane %v24_v9, 1  ;;  %v34_v12 = vrot.slane %v33_v10, 1  ;;  %v20_v13 = vld [vmem:[#allocation2] sm:$0x1] }
   0xc   :  { %v29_v14 = vld [vmem:[#allocation3] sm:$0x1] }
   0xd   :  { %v26_v15 = vadd.f32 %v25_v11, %v24_v9  ;;  %v35_v16 = vadd.f32 %v34_v12, %v33_v10 }
   0xf   :  { %v27_v17 = vadd.f32 %v26_v15, %v20_v13  ;;  %v36_v18 = vadd.f32 %v35_v16, %v29_v14 }
  0x11   :  { %28 = vst [vmem:[#allocation2] sm:$0x1] %v27_v17 }
  0x12   :  { %37 = vst [vmem:[#allocation3] sm:$0x1] %v36_v18 }
  0x18   :  { %v41_v19 = vld [vmem:[#allocation2] sm:$0x1] }
  0x19   :  { %v43_v20 = vsel %vm42_vm0, %v41_v19, 0.0  ;;  %v55_v21 = vld [vmem:[#allocation3] sm:$0x1] }
  0x1a   :  { %44 = vadd.xlane.f32.xlu0 %v43_v20  ;;  %v56_v22 = vsel %vm42_vm0, %v55_v21, 0.0 }
  0x22   :  { %57 = vadd.xlane.f32.xlu0 %v56_v22 }
  0x8d   :  { %v45_v23 = vpop.xlane.xlu0 %44 }
  0x8e   :  { %v46_v24 = vrot.slane %v45_v23, 4 }
  0x90   :  { %v47_v25 = vadd.f32 %v46_v24, %v45_v23 }
  0x92   :  { %v48_v26 = vrot.slane %v47_v25, 2 }
  0x94   :  { %v49_v27 = vadd.f32 %v48_v26, %v47_v25 }
  0x95   :  { %v58_v28 = vpop.xlane.xlu0 %57 }
  0x96   :  { %v59_v29 = vrot.slane %v58_v28, 4  ;;  %v50_v30 = vrot.slane %v49_v27, 1 }
  0x98   :  { %v60_v31 = vadd.f32 %v59_v29, %v58_v28  ;;  %v51_v32 = vadd.f32 %v50_v30, %v49_v27 }
  0x9a   :  { %v61_v33 = vrot.slane %v60_v31, 2  ;;  %83 = vpush %v51_v32 }
  0x9c   :  { %v62_v34 = vadd.f32 %v61_v33, %v60_v31 }
  0x9e   :  { %v63_v35 = vrot.slane %v62_v34, 1 }
  0xa0   :  { %v64_v36 = vadd.f32 %v63_v35, %v62_v34 }
  0xa2   :  { %85 = vpush %v64_v36 }
  0xcb   :  { %s84_s0 = spop %83 }
  0xcc   :  { %54 = sst [smem:[#allocation4]] %s84_s0 }
  0xd3   :  { %s86_s15 = spop %85 }
  0xd4   :  { %67 = sst [smem:[#allocation4 + $0x1]] %s86_s15 }
  0xd5   :  { %76 = dma.smem_to_vmem %s104_s16, 16, %s74_s14, [#allocation5]  }
  0xd6   :  { %101 = dma.done.wait [#allocation5], 16  }
  0xd7   :  { %102 = vsyncadd [#allocation5], 4294967280 }
  0xd8   :  { %81 = sfence }
  0xd9   :  { %82 = vsyncpa [#allocation5], 1 }

// kernel: radiscrim_loss.3
= control target key start
LH: loop header
LB: loop body
LE: loop exit
PB: predicated region body
PF: predicated region fallthrough
CT: control target
= control target key end

     0   :  { %8 = vsyncpa [#allocation5], 0  ;;  %s231_s0 = inlined_call_operand.vmem [shape: f32[2], index: 0, kind: input, shape index: {}]   ;;  %s232_s1 = inlined_call_operand.vmem [shape: f32[8,128], index: 1, kind: input, shape index: {}]   ;;  %s233_s2 = inlined_call_operand.vmem [shape: f32[8,128], index: 2, kind: input, shape index: {}]   ;;  %s234_s3 = inlined_call_operand.vmem [shape: f32[2], index: 3, kind: output, shape index: {}]  }
   0x1   :  { %9 = vsyncpa [#allocation6], 0  ;;  %s15_s14 = sshll.u32 %s231_s0, 4  ;;  %s196_s15 = smov [#allocation4]   ;;  %s16_s14 = int_to_ptr.vmem [resolvable:$true] %s15_s14 }
   0x2   :  { %18 = dma.vmem_to_smem %s16_s14, 16, %s196_s15, [#allocation5]  }
   0x3   :  { %192 = dma.done.wait [#allocation5], 16  }
   0x4   :  { %193 = vsyncadd [#allocation5], 4294967280 }
   0x5   :  { %27 = sfence }
   0x6   :  { %s34_s16 = sld [smem:[#allocation4]]  ;;  %v197_v0 = vmov 0.0   ;;  %v37_v1 = vld [vmem:[%s233_s2] sm:$0xff]  ;;  %v38_v13 = vlaneseq  ;;  %vm109_vm3 = vcmask 1040384   ;;  %s140_s22 = sshll.u32 %s234_s3, 4  ;;  %s141_s22 = int_to_ptr.vmem [resolvable:$true] %s140_s22 }
   0x7   :  { %32 = vst [vmem:[#allocation2] sm:$0x1] %v197_v0  ;;  %s151_s17 = sld [smem:[#allocation4 + $0x1]]  ;;  %v36_v2 = vld [vmem:[%s232_s1] sm:$0xff]  ;;  %s198_s24 = smov [#allocation7]  }
   0x8   :  { %33 = vst [vmem:[#allocation3] sm:$0x1] %v197_v0  ;;  %v39_v14 = vshrl.u32 %v38_v13, 7  ;;  %v41_v19 = vand.u32 127, %v38_v13 }
   0xa   :  { %v45_v20 = vmul.u32 128, %v39_v14 }
   0xc   :  { %v52_v3 = vstv %s34_s16  ;;  %v46_v27 = vadd.s32 %v45_v20, %v41_v19 }
   0xd   :  { %v50_v4 = vstv %s151_s17  ;;  %v53_v5 = vsub.f32 %v37_v1, %v52_v3 }
   0xe   :  { %v51_v6 = vsub.f32 %v36_v2, %v50_v4  ;;  %vm47_vm1 = vcmp.lt.s32.totalorder %v46_v27, 768  ;;  %v85_v55 = vld [vmem:[#allocation2] sm:$0x1] }
   0xf   :  { %v71_v7 = vand.u32 2147483647, %v53_v5  ;;  %v69_v25 = vsub.f32 0.0, %v53_v5  ;;  %v152_v38 = vsel %vm47_vm1, 1.0, %v197_v0  ;;  %v95_v54 = vld [vmem:[#allocation3] sm:$0x1] }
  0x10   :  { %v55_v8 = vand.u32 2147483647, %v51_v6  ;;  %v54_v34 = vmax.f32 %v51_v6, 0.0 }
  0x11   :  { %v72_v9 = vsub.f32 0.0, %v71_v7  ;;  %v70_v32 = vmax.f32 %v69_v25, 0.0 }
  0x12   :  { %v56_v10 = vsub.f32 0.0, %v55_v8 }
  0x13   :  { %v73_v11 = vmul.f32 1.442695, %v72_v9 }
  0x14   :  { %v57_v12 = vmul.f32 1.442695, %v56_v10 }
  0x15   :  { %160 = vpow2.f32 %v73_v11 }
  0x16   :  { %162 = vpow2.f32 %v57_v12 }
  0x1b   :  { %v161_v15 = vpop.eup %160 }
  0x1c   :  { %v163_v16 = vpop.eup %162  ;;  %v75_v17 = vadd.f32 1.0, %v161_v15  ;;  %v78_v18 = vmul.f32 -0.5, %v161_v15  ;;  %v81_v26 = vand.u32 2147483647, %v161_v15 }
  0x1d   :  { %v59_v21 = vadd.f32 1.0, %v163_v16  ;;  %v62_v22 = vmul.f32 -0.5, %v163_v16  ;;  %v65_v28 = vand.u32 2147483647, %v163_v16 }
  0x1e   :  { %164 = vlog2.f32 %v75_v17  ;;  %v79_v23 = vadd.f32 1.0, %v78_v18  ;;  %vm82_vm0 = vcmp.lt.f32.partialorder %v81_v26, 0.0004427343 }
  0x1f   :  { %166 = vlog2.f32 %v59_v21  ;;  %v63_v24 = vadd.f32 1.0, %v62_v22  ;;  %vm66_vm2 = vcmp.lt.f32.partialorder %v65_v28, 0.0004427343 }
  0x20   :  { %v80_v29 = vmul.f32 %v161_v15, %v79_v23 }
  0x21   :  { %v64_v31 = vmul.f32 %v163_v16, %v63_v24 }
  0x24   :  { %v165_v30 = vpop.eup %164 }
  0x25   :  { %v167_v33 = vpop.eup %166  ;;  %v77_v35 = vmul.f32 0.6931472, %v165_v30 }
  0x26   :  { %v61_v36 = vmul.f32 0.6931472, %v167_v33 }
  0x27   :  { %v83_v37 = vsel %vm82_vm0, %v80_v29, %v77_v35 }
  0x28   :  { %v67_v39 = vsel %vm66_vm2, %v64_v31, %v61_v36  ;;  %v84_v40 = vadd.f32 %v83_v37, %v70_v32 }
  0x29   :  { %v68_v41 = vadd.f32 %v67_v39, %v54_v34 }
  0x2a   :  { %v96_v42 = vmul.f32 %v152_v38, %v84_v40 }
  0x2b   :  { %v86_v43 = vmul.f32 %v152_v38, %v68_v41 }
  0x2c   :  { %v97_v44 = vrot.slane %v96_v42, 4 }
  0x2d   :  { %v87_v45 = vrot.slane %v86_v43, 4 }
  0x2e   :  { %v98_v46 = vadd.f32 %v97_v44, %v96_v42 }
  0x2f   :  { %v88_v47 = vadd.f32 %v87_v45, %v86_v43 }
  0x30   :  { %v99_v48 = vrot.slane %v98_v46, 2 }
  0x31   :  { %v89_v49 = vrot.slane %v88_v47, 2 }
  0x32   :  { %v100_v50 = vadd.f32 %v99_v48, %v98_v46 }
  0x33   :  { %v90_v51 = vadd.f32 %v89_v49, %v88_v47 }
  0x34   :  { %v101_v52 = vrot.slane %v100_v50, 1 }
  0x35   :  { %v91_v53 = vrot.slane %v90_v51, 1 }
  0x36   :  { %v102_v56 = vadd.f32 %v101_v52, %v100_v50 }
  0x37   :  { %v92_v57 = vadd.f32 %v91_v53, %v90_v51 }
  0x38   :  { %v103_v58 = vadd.f32 %v102_v56, %v95_v54 }
  0x39   :  { %v93_v59 = vadd.f32 %v92_v57, %v85_v55 }
  0x3a   :  { %104 = vst [vmem:[#allocation3] sm:$0x1] %v103_v58 }
  0x3b   :  { %94 = vst [vmem:[#allocation2] sm:$0x1] %v93_v59 }
  0x41   :  { %v122_v62 = vld [vmem:[#allocation3] sm:$0x1] }
  0x42   :  { %v108_v60 = vld [vmem:[#allocation2] sm:$0x1]  ;;  %v123_v63 = vsel %vm109_vm3, %v122_v62, 0.0 }
  0x43   :  { %v110_v61 = vsel %vm109_vm3, %v108_v60, 0.0 }
  0x44   :  { %111 = vadd.xlane.f32.xlu0 %v110_v61 }
  0x4c   :  { %124 = vadd.xlane.f32.xlu0 %v123_v63 }
  0xb7   :  { %v112_v0 = vpop.xlane.xlu0 %111 }
  0xb8   :  { %v113_v1 = vrot.slane %v112_v0, 4 }
  0xba   :  { %v114_v2 = vadd.f32 %v113_v1, %v112_v0 }
  0xbc   :  { %v115_v3 = vrot.slane %v114_v2, 2 }
  0xbe   :  { %v116_v4 = vadd.f32 %v115_v3, %v114_v2 }
  0xbf   :  { %v125_v5 = vpop.xlane.xlu0 %124 }
  0xc0   :  { %v126_v6 = vrot.slane %v125_v5, 4  ;;  %v117_v7 = vrot.slane %v116_v4, 1 }
  0xc2   :  { %v127_v8 = vadd.f32 %v126_v6, %v125_v5  ;;  %v118_v9 = vadd.f32 %v117_v7, %v116_v4 }
  0xc4   :  { %v128_v10 = vrot.slane %v127_v8, 2  ;;  %153 = vpush %v118_v9 }
  0xc6   :  { %v129_v11 = vadd.f32 %v128_v10, %v127_v8 }
  0xc8   :  { %v130_v12 = vrot.slane %v129_v11, 1 }
  0xca   :  { %v131_v13 = vadd.f32 %v130_v12, %v129_v11 }
  0xcc   :  { %155 = vpush %v131_v13 }
  0xf5   :  { %s154_s0 = spop %153 }
  0xf6   :  { %121 = sst [smem:[#allocation7]] %s154_s0 }
  0xfd   :  { %s156_s23 = spop %155 }
  0xfe   :  { %134 = sst [smem:[#allocation7 + $0x1]] %s156_s23 }
  0xff   :  { %143 = dma.smem_to_vmem %s198_s24, 16, %s141_s22, [#allocation6]  }
 0x100   :  { %194 = dma.done.wait [#allocation6], 16  }
 0x101   :  { %195 = vsyncadd [#allocation6], 4294967280 }
 0x102   :  { %148 = sfence }
 0x103   :  { %149 = vsyncpa [#allocation5], 1 }
 0x104   :  { %150 = vsyncpa [#allocation6], 1 }

</bundles_post_ra>
